<compile_context>
chip_gen: v7x
topology: tpu7x:2x2x1
jax: 0.10.0
libtpu: 0.0.40
codegen_flags: <defaults>
</compile_context>

<pallas_src>
import functools

import numpy as np
import jax
import jax.numpy as jnp
from jax.experimental import pallas as pl
from jax.experimental.pallas import tpu as pltpu


# ----------------------------------------------------------------------------
# Minimal nltk.Tree stand-in + deterministic construction of the module buffers
# (replicates HierarchicalLLLoss.__init__ with numpy instead of torch/nltk).
# ----------------------------------------------------------------------------
class T:
    def __init__(self, label, children):
        self.label = label
        self.children = children


def get_label(node):
    return node.label if isinstance(node, T) else node


def treepositions(node):
    if not isinstance(node, T):
        return [()]
    pos = [()]
    for i, c in enumerate(node.children):
        pos.extend([(i,) + p for p in treepositions(c)])
    return pos


def leaf_positions(node):
    if not isinstance(node, T):
        return [()]
    out = []
    for i, c in enumerate(node.children):
        out.extend([(i,) + p for p in leaf_positions(c)])
    return out


def get_node(tree, pos):
    for i in pos:
        tree = tree.children[i]
    return tree


def build_hierarchy_params(hierarchy, weights_tree, leaf_classes, intern_classes):
    positions = treepositions(hierarchy)
    assert positions == treepositions(weights_tree)
    positions_nodes_dic = {get_label(get_node(hierarchy, p)): p for p in positions}
    num_leaf = len(leaf_classes)
    num_intern = len(intern_classes)
    positions_leaves = [positions_nodes_dic[c] for c in leaf_classes]
    positions_intern = [positions_nodes_dic[c] for c in intern_classes]
    positions_edges = positions[1:]
    index_map_leaves = {positions_leaves[i]: i for i in range(num_leaf)}
    index_map_edges = {positions_edges[i]: i for i in range(len(positions_edges))}
    edges_from_leaf = [
        [index_map_edges[p[:i]] for i in range(len(p), 0, -1)] for p in positions_leaves
    ]
    num_edges = max(len(p) for p in edges_from_leaf)

    def get_leaf_positions(position):
        node = get_node(hierarchy, position)
        if isinstance(node, T):
            return leaf_positions(node)
        return [()]

    leaf_indices = [
        [index_map_leaves[pos + l] for l in get_leaf_positions(pos)]
        for pos in positions_edges
    ]

    onehot_den = np.zeros((num_leaf + num_intern, num_leaf, num_edges), np.float32)
    onehot_num = np.zeros_like(onehot_den)
    weights = np.zeros((num_leaf + num_intern, num_edges), np.float32)

    for i in range(num_leaf):
        j = 0
        for j, k in enumerate(edges_from_leaf[i]):
            onehot_num[i, leaf_indices[k], j] = 1.0
            weights[i, j] = float(get_label(get_node(weights_tree, positions_edges[k])))
        for j, k in enumerate(edges_from_leaf[i][1:]):
            onehot_den[i, leaf_indices[k], j] = 1.0
        onehot_den[i, :, j + 1] = 1.0

    for i in range(num_intern):
        pos_node = positions_intern[i]
        leaves_from_node = [
            index_map_leaves[pos_node + l] for l in get_leaf_positions(pos_node)
        ]
        onehot_den[num_leaf + i] = np.minimum(onehot_den[leaves_from_node].sum(0), 1.0)
        onehot_num[num_leaf + i] = np.minimum(onehot_num[leaves_from_node].sum(0), 1.0)
        weights[num_leaf + i] = weights[leaves_from_node].mean(0)

    return onehot_num, onehot_den, weights, num_edges


# ----------------------------------------------------------------------------
# Pallas kernel: one grid step per TILE_B-row tile of a single target group.
# ----------------------------------------------------------------------------
def _hxe_kernel(tile_tid_ref, x_ref, table_ref, w_ref, out_ref, *, num_edges):
    # x_ref:     (TILE_B, C)    f32   logits rows of one target-group tile
    # table_ref: (1, C, 2E)     bf16  [onehot_num | onehot_den] slab of this tile's target
    # w_ref:     (1, 1, E)      f32   edge weights of this tile's target
    # out_ref:   (1, 1, TILE_B) f32   per-row loss (lane-dense store)
    del tile_tid_ref  # only consumed by the index_maps

    x = x_ref[...]
    x = x - jnp.max(x, axis=-1, keepdims=True)
    # Unnormalized exp: the softmax Z cancels in -log(num/den) and in the (num != 0) mask.
    e = jnp.exp(x).astype(jnp.bfloat16)                        # bf16 feed for the MXU

    slab = table_ref[0]                                        # (C, 2E) bf16, 0/1 exact
    nd = jnp.dot(e, slab, preferred_element_type=jnp.float32)  # (TILE_B, 2E), f32 accumulation
    num = nd[:, :num_edges]                                    # (TILE_B, E)
    den = nd[:, num_edges:]                                    # (TILE_B, E)

    mask = num != 0.0
    safe_num = jnp.where(mask, num, 1.0)
    safe_den = jnp.where(mask, den, 1.0)
    vals = jnp.where(mask, jnp.log(safe_den / safe_num), 0.0)  # == -log(num/den), single log

    w = w_ref[0]                                               # (1, E)
    row_loss = jnp.sum(w * vals, axis=-1)                      # (TILE_B,) ; flip is a no-op for a sum
    out_ref[0, 0, :] = row_loss


def hierarchical_ce_loss(logits, target, onehot_num, onehot_den, weights, *, tile_b=128):
    B, C = logits.shape
    Tcls, _, E = onehot_num.shape
    tile_b = int(tile_b)
    assert tile_b % 8 == 0, "tile_b must be a multiple of 8 (sublane tiling)"

    # --- one-time parameter prep (cached on the module in real use) ---
    # (T, C, 2E) bf16: the dot is a plain NN contraction on the MXU (no per-step slab transpose).
    table = jnp.concatenate([onehot_num, onehot_den], axis=2).astype(jnp.bfloat16)
    weights3 = jnp.asarray(weights, jnp.float32).reshape(Tcls, 1, E)

    # --- target-grouped row tiling (all static shapes) ---
    t32 = jnp.asarray(target, jnp.int32)
    order = jnp.argsort(t32)
    sorted_t = t32[order]
    counts = jnp.zeros((Tcls,), jnp.int32).at[t32].add(1)
    tiles_per_group = (counts + tile_b - 1) // tile_b
    group_tile_start = jnp.concatenate(
        [jnp.zeros((1,), jnp.int32), jnp.cumsum(tiles_per_group)[:-1].astype(jnp.int32)])
    group_row_start = jnp.concatenate(
        [jnp.zeros((1,), jnp.int32), jnp.cumsum(counts)[:-1].astype(jnp.int32)])

    # Static upper bound on row tiles: each nonempty group adds at most one partial tile.
    num_tiles = B // tile_b + min(Tcls, B)

    # Padded row position of each (sorted) sample + contiguous padded logits slab.
    local = jnp.arange(B, dtype=jnp.int32) - group_row_start[sorted_t]
    padded_pos = group_tile_start[sorted_t] * tile_b + local
    x_padded = jnp.zeros((num_tiles * tile_b, C), jnp.float32).at[padded_pos].set(
        logits[order].astype(jnp.float32))

    # Per-tile target id (scalar prefetch); padding tiles clamp to a valid class id — their
    # outputs are never read.
    tile_end = jnp.cumsum(tiles_per_group).astype(jnp.int32)
    tile_tid = jnp.searchsorted(
        tile_end, jnp.arange(num_tiles, dtype=jnp.int32), side="right").astype(jnp.int32)
    tile_tid = jnp.minimum(tile_tid, Tcls - 1)

    grid_spec = pltpu.PrefetchScalarGridSpec(
        num_scalar_prefetch=1,
        grid=(num_tiles,),
        in_specs=[
            pl.BlockSpec((tile_b, C), lambda t, tid: (t, 0)),            # contiguous logits tile
            pl.BlockSpec((1, C, 2 * E), lambda t, tid: (tid[t], 0, 0)),  # num|den slab of tile's target
            pl.BlockSpec((1, 1, E), lambda t, tid: (tid[t], 0, 0)),      # edge weights of tile's target
        ],
        out_specs=pl.BlockSpec((1, 1, tile_b), lambda t, tid: (t, 0, 0)),
    )

    # VMEM budget: double-buffered logits tile + table slab + headroom. Cap below v7x physical.
    vmem_est = 2 * (tile_b * C * 4 + C * max(2 * E, 128) * 2 + tile_b * 4) + (2 << 20)
    vmem_limit = int(min(max(vmem_est, 16 << 20), 48 << 20))

    cost = pl.CostEstimate(
        flops=2 * num_tiles * tile_b * C * 2 * E,
        transcendentals=num_tiles * tile_b * (C + E),
        bytes_accessed=(num_tiles * tile_b * C * 4
                        + min(num_tiles, Tcls) * C * 2 * E * 2
                        + num_tiles * tile_b * 4),
    )

    per_row = pl.pallas_call(
        functools.partial(_hxe_kernel, num_edges=E),
        out_shape=jax.ShapeDtypeStruct((num_tiles, 1, tile_b), jnp.float32),
        grid_spec=grid_spec,
        compiler_params=pltpu.CompilerParams(
            dimension_semantics=("parallel",),   # independent row tiles (2 TCs on v7x)
            vmem_limit_bytes=vmem_limit,
        ),
        cost_estimate=cost,
    )(tile_tid, x_padded, table, weights3)

    # Drop padded rows; mean over the B real samples.
    per_sample = per_row.reshape(num_tiles * tile_b)[padded_pos]
    return jnp.mean(per_sample)


# ----------------------------------------------------------------------------
# Pure-numpy reference (mirrors the PyTorch forward; optionally mirrors the
# kernel's bf16 MXU feed so parity holds at tight tolerance).
# ----------------------------------------------------------------------------
def ref_loss(logits, target, onehot_num, onehot_den, weights, *, bf16_probs=True):
    x = np.asarray(logits, np.float64)
    x = x - x.max(1, keepdims=True)
    e = np.exp(x)
    if bf16_probs:
        e = np.asarray(jnp.asarray(e.astype(np.float32), jnp.bfloat16)).astype(np.float64)
    p = e / e.sum(1, keepdims=True)
    on = np.asarray(onehot_num, np.float64)[target]           # (B, C, E)
    od = np.asarray(onehot_den, np.float64)[target]
    num = np.einsum("bc,bce->be", p, on)
    den = np.einsum("bc,bce->be", p, od)
    vals = np.zeros_like(num)
    mask = num != 0
    vals[mask] = -np.log(num[mask] / den[mask])
    w = np.asarray(weights, np.float64)[target]
    return float(np.mean(np.sum(w * vals, axis=1)))


if __name__ == "__main__":
    # Small synthetic hierarchy (depth 3): 6 leaves, 4 internal classes.
    hier = T("root", [
        T("A", [T("A1", ["a", "b"]), T("A2", ["c", "d"])]),
        T("B", ["e", "f"]),
    ])
    wtree = T(0.0, [
        T(1.0, [T(0.5, [0.25, 0.3]), T(0.45, [0.2, 0.22])]),
        T(0.9, [0.4, 0.35]),
    ])
    leaf_classes = ["a", "b", "c", "d", "e", "f"]
    intern_classes = ["A", "A1", "A2", "B"]

    onehot_num_np, onehot_den_np, weights_np, num_edges = build_hierarchy_params(
        hier, wtree, leaf_classes, intern_classes
    )
    num_leaf = len(leaf_classes)
    num_total = num_leaf + len(intern_classes)

    B, C = 16, num_leaf
    key = jax.random.PRNGKey(0)
    k1, k2 = jax.random.split(key)
    logits = jax.random.normal(k1, (B, C), dtype=jnp.float32)
    target = jax.random.randint(k2, (B,), 0, num_total, dtype=jnp.int32)

    onehot_num = jnp.asarray(onehot_num_np)
    onehot_den = jnp.asarray(onehot_den_np)
    weights = jnp.asarray(weights_np)

    loss = hierarchical_ce_loss(
        logits, target, onehot_num, onehot_den, weights, tile_b=8
    )
    loss = jax.block_until_ready(loss)

    expected = ref_loss(np.asarray(logits), np.asarray(target),
                        onehot_num_np, onehot_den_np, weights_np, bf16_probs=True)
    assert np.allclose(float(loss), expected, rtol=1e-4, atol=1e-5), (float(loss), expected)

    print("KERNEL_OK")
</pallas_src>

<mosaic_0001>
module attributes {stable_mosaic.version = 11 : i64} {
  func.func @_hxe_kernel(%arg0: i32, %arg1: memref<12xi32, #tpu.memory_space<smem>>, %arg2: memref<8x6xf32, #tpu.memory_space<vmem>>, %arg3: memref<1x6x6xbf16, #tpu.memory_space<vmem>>, %arg4: memref<1x1x3xf32, #tpu.memory_space<vmem>>, %arg5: memref<1x1x8xf32, #tpu.memory_space<vmem>>) attributes {dimension_semantics = [#tpu.dimension_semantics<parallel>], iteration_bounds = array<i64: 12>, scalar_prefetch = 1 : i64, scratch_operands = 0 : i64, tpu.core_type = #tpu.core_type<tc>, window_params = [{transform_indices = @transform_0, window_bounds = array<i64: 8, 6>}, {transform_indices = @transform_1, window_bounds = array<i64: 1, 6, 6>}, {transform_indices = @transform_2, window_bounds = array<i64: 1, 1, 3>}, {transform_indices = @transform_3, window_bounds = array<i64: 1, 1, 8>}]} {
    %c0 = arith.constant 0 : index
    %c0_0 = arith.constant 0 : index
    %0 = vector.load %arg2[%c0, %c0_0] : memref<8x6xf32, #tpu.memory_space<vmem>>, vector<8x6xf32>
    %cst = arith.constant dense<0xFF800000> : vector<8xf32>
    %1 = vector.multi_reduction <maximumf>, %0, %cst [1] : vector<8x6xf32> to vector<8xf32>
    %2 = vector.shape_cast %1 : vector<8xf32> to vector<8x1xf32>
    %3 = vector.broadcast %2 : vector<8x1xf32> to vector<8x6xf32>
    %4 = arith.subf %0, %3 : vector<8x6xf32>
    %5 = math.exp %4 : vector<8x6xf32>
    %6 = arith.truncf %5 : vector<8x6xf32> to vector<8x6xbf16>
    %c0_1 = arith.constant 0 : index
    %c0_2 = arith.constant 0 : index
    %c0_3 = arith.constant 0 : index
    %7 = vector.load %arg3[%c0_1, %c0_2, %c0_3] : memref<1x6x6xbf16, #tpu.memory_space<vmem>>, vector<1x6x6xbf16>
    %8 = vector.shape_cast %7 : vector<1x6x6xbf16> to vector<6x6xbf16>
    %cst_4 = arith.constant dense<0.000000e+00> : vector<8x6xf32>
    %9 = tpu.matmul %6, %8, %cst_4 {dimension_numbers = #tpu.dot_dimension_numbers<[1], [0], [0], [1], [0, 0, 1, 1], [], []>} : vector<8x6xbf16>, vector<6x6xbf16>, vector<8x6xf32> -> vector<8x6xf32>
    %10 = vector.extract_strided_slice %9 {offsets = [0, 0], sizes = [8, 3], strides = [1, 1]} : vector<8x6xf32> to vector<8x3xf32>
    %11 = vector.extract_strided_slice %9 {offsets = [0, 3], sizes = [8, 3], strides = [1, 1]} : vector<8x6xf32> to vector<8x3xf32>
    %cst_5 = arith.constant 0.000000e+00 : f32
    %12 = vector.broadcast %cst_5 : f32 to vector<8x3xf32>
    %13 = arith.cmpf one, %10, %12 : vector<8x3xf32>
    %cst_6 = arith.constant 1.000000e+00 : f32
    %14 = vector.broadcast %cst_6 : f32 to vector<8x3xf32>
    %15 = arith.select %13, %10, %14 : vector<8x3xi1>, vector<8x3xf32>
    %cst_7 = arith.constant 1.000000e+00 : f32
    %16 = vector.broadcast %cst_7 : f32 to vector<8x3xf32>
    %17 = arith.select %13, %11, %16 : vector<8x3xi1>, vector<8x3xf32>
    %18 = arith.divf %17, %15 : vector<8x3xf32>
    %19 = math.log %18 : vector<8x3xf32>
    %cst_8 = arith.constant 0.000000e+00 : f32
    %20 = vector.broadcast %cst_8 : f32 to vector<8x3xf32>
    %21 = arith.select %13, %19, %20 : vector<8x3xi1>, vector<8x3xf32>
    %c0_9 = arith.constant 0 : index
    %c0_10 = arith.constant 0 : index
    %c0_11 = arith.constant 0 : index
    %22 = vector.load %arg4[%c0_9, %c0_10, %c0_11] : memref<1x1x3xf32, #tpu.memory_space<vmem>>, vector<1x1x3xf32>
    %23 = vector.shape_cast %22 : vector<1x1x3xf32> to vector<1x3xf32>
    %24 = vector.broadcast %23 : vector<1x3xf32> to vector<8x3xf32>
    %25 = arith.mulf %24, %21 : vector<8x3xf32>
    %cst_12 = arith.constant dense<0.000000e+00> : vector<8xf32>
    %26 = vector.multi_reduction <add>, %25, %cst_12 [1] : vector<8x3xf32> to vector<8xf32>
    %c0_13 = arith.constant 0 : index
    %c0_14 = arith.constant 0 : index
    %c0_15 = arith.constant 0 : index
    %27 = vector.load %arg5[%c0_13, %c0_14, %c0_15] : memref<1x1x8xf32, #tpu.memory_space<vmem>>, vector<1x1x8xf32>
    %28 = vector.shape_cast %27 : vector<1x1x8xf32> to vector<8xf32>
    %29 = vector.shape_cast %26 : vector<8xf32> to vector<1x1x8xf32>
    tpu.vector_store %arg5[%c0_13, %c0_14, %c0_15], %29 {strides = array<i32>} : memref<1x1x8xf32, #tpu.memory_space<vmem>>, vector<1x1x8xf32>,
    return
  }
  func.func @transform_0(%arg0: i32, %arg1: memref<12xi32, #tpu.memory_space<smem>>) -> (i32, i32) {
    %c0_i32 = arith.constant 0 : i32
    %c0_i32_0 = arith.constant 0 : i32
    return %arg0, %c0_i32 : i32, i32
  }
  func.func @transform_1(%arg0: i32, %arg1: memref<12xi32, #tpu.memory_space<smem>>) -> (i32, i32, i32) {
    %0 = arith.index_cast %arg0 : i32 to index
    %1 = memref.load %arg1[%0] : memref<12xi32, #tpu.memory_space<smem>>
    %c0_i32 = arith.constant 0 : i32
    %c0_i32_0 = arith.constant 0 : i32
    %c0_i32_1 = arith.constant 0 : i32
    return %1, %c0_i32, %c0_i32_0 : i32, i32, i32
  }
  func.func @transform_2(%arg0: i32, %arg1: memref<12xi32, #tpu.memory_space<smem>>) -> (i32, i32, i32) {
    %0 = arith.index_cast %arg0 : i32 to index
    %1 = memref.load %arg1[%0] : memref<12xi32, #tpu.memory_space<smem>>
    %c0_i32 = arith.constant 0 : i32
    %c0_i32_0 = arith.constant 0 : i32
    %c0_i32_1 = arith.constant 0 : i32
    return %1, %c0_i32, %c0_i32_0 : i32, i32, i32
  }
  func.func @transform_3(%arg0: i32, %arg1: memref<12xi32, #tpu.memory_space<smem>>) -> (i32, i32, i32) {
    %c0_i32 = arith.constant 0 : i32
    %c0_i32_0 = arith.constant 0 : i32
    %c0_i32_1 = arith.constant 0 : i32
    return %arg0, %c0_i32, %c0_i32_0 : i32, i32, i32
  }
}

</mosaic_0001>

<bundles_post_ra>
// kernel: tpu_custom_call.1
= control target key start
LH: loop header
LB: loop body
LE: loop exit
PB: predicated region body
PF: predicated region fallthrough
CT: control target
= control target key end

     0   :  { %s502_s0 = inlined_call_operand.vmem [shape: s32[12], index: 0, kind: input, shape index: {}]   ;;  %s503_s1 = inlined_call_operand.vmem [shape: f32[96,6], index: 1, kind: input, shape index: {}]   ;;  %s504_s2 = inlined_call_operand.vmem [shape: bf16[10,6,6], index: 2, kind: input, shape index: {}]   ;;  %s505_s3 = inlined_call_operand.vmem [shape: f32[10,1,3], index: 3, kind: input, shape index: {}]   ;;  %s506_s4 = inlined_call_operand.vmem [shape: f32[12,1,8], index: 4, kind: output, shape index: {}]  }
   0x1   :  { %s9_s17 = sshll.u32 %s502_s0, 4  ;;  %s10_s17 = int_to_ptr.vmem [resolvable:$true] %s9_s17 }
   0x2   :  { %s413_s18 = scalar_lea.vmem %s10_s17, 16  ;;  %p418_p1 = scmp.lt.s32.totalorder %s10_s17, %s10_s17 }
   0x3   :  { %p414_p0 = scmp.ne.s32.totalorder %s10_s17, %s413_s18  ;;  %p419_p2 = scmp.lt.s32.totalorder %s413_s18, %s413_s18 }
   0x5   :  { %p420_p3 = por %p419_p2, %p418_p1 }
   0x7   :  { %p421_p4 = pnand %p420_p3, %p414_p0 }
   0x9   :  { %424 = shalt.err (!%p421_p4)  }
   0xa   :  { %s435_s19 = smov [#allocation3]  }
   0xb   :  { %12 = dma.vmem_to_smem %s10_s17, 16, %s435_s19, [#allocation2] }
   0xc   :  { %429 = dma.done.wait [#allocation2], 16 }
   0xd   :  { %430 = vsyncadd [#allocation2], 4294967280 }
   0xe   :  { %14 = sfence }
   0xf   :  { %s467_s20 = smov 0  }
  0x10 LB: > { %s473_s0 = sadd.s32 4294967295, %s433_s20   ;;  %p380_p5 = scmp.ge.s32.totalorder %s433_s20, 1  ;;  %s433_s20 = sphi %s467_s20, %s20_s20  }
  0x11   : > { %p168_p6 = scmp.lt.s32.totalorder %s433_s20, 13 }
  0x13   : > { %p169_p7 = pnand %p380_p5, %p168_p6 }
  0x14   : > { %p198_p8 = scmp.lt.s32.totalorder (!%p169_p7), %s473_s0, 11  ;;  %vm218_vm0 = vcmask (!%p169_p7), 48128   ;;  %s202_s26 = sld [smem:[#allocation3 + %s473_s0]] (!%p169_p7)  ;;  %vm230_vm1 = vcmask (!%p169_p7), 1042432   ;;  %v436_v3 = vmov (!%p169_p7), 0.0   ;;  %vm437_vm2 = vmmov (!%p169_p7), 0  }
  0x15   : > { %172 = sbr.rel (%p169_p7) target bundleno = 685 (0x2ad), region = 32  ;;  %389 = vmatprep.subr.bf16.mxu0 (!%p169_p7), %v436_v3  ;;  %391 = vmatprep.mubr.msk.bf16.mxu0 (!%p169_p7), %vm437_vm2, %v436_v3  ;;  %s438_s5 = smov (!%p169_p7), 125   ;;  %vm294_vm4 = vcmask (!%p169_p7), 23552   ;;  %v299_v25 = vlaneseq (!%p169_p7)  ;;  %vm306_vm5 = vcmask (!%p169_p7), 57344  }
  0x16   : > { %s208_s6 = sld [smem:[#allocation3 + %s473_s0]] (!%p169_p7) }
  0x17   : > { %v300_v26 = vand.u32 (!%p169_p7), 127, %v299_v25  ;;  %v302_v27 = vshrl.u32 (!%p169_p7), %v299_v25, 7 }
  0x19   : > { %v303_v28 = vsub.s32 (!%p169_p7), %v300_v26, %v302_v27 }
  0x1a   : > { %p203_p9 = scmp.lt.s32.totalorder (!%p169_p7), %s202_s26, 9 }
  0x1c   : > { %s479_s21 = scalar_select %p198_p8, %s473_s0, 11 }
  0x1d   : > { %s508_s26 = smov (!%p203_p9, %s202_s26), 9  ;;  %p209_p10 = scmp.lt.s32.totalorder %s208_s6, 9 }
  0x1e   : > { %s381_s22 = sshll.u32 %s479_s21, 3  ;;  %s382_s27 = sshll.u32 %s508_s26, 2 }
  0x1f   : > { %s201_s25 = scalar_lea.vmem %s503_s1, %s381_s22  ;;  %s206_s30 = scalar_lea.vmem %s504_s2, %s382_s27 }
  0x20   : > { %v217_v0 = vld [vmem:[%s201_s25] sm:$0xff]  ;;  %s510_s6 = smov (!%p209_p10, %s208_s6), 9  ;;  %s215_s12 = scalar_lea.vmem %s506_s4, %s479_s21 }
  0x21   : > { %v219_v1 = vsel %vm218_vm0, %v217_v0, -inf  ;;  %v226_v2 = vld [vmem:[%s206_s30] sm:$0x7]  ;;  %s211_s9 = scalar_lea.vmem %s505_s3, %s510_s6 }
  0x22   : > { %220 = vmax.xlane.f32.xlu0 %v219_v1  ;;  %v232_v4 = vsel %vm230_vm1, %v226_v2, 0  ;;  %v384_v21 = vld [vmem:[%s211_s9] ss:$0 sm:$0xff] }
  0x23   : > { %390 = vmatpush3.bf16.msra.mxu0 %v232_v4 }
  0xaf   : > { %v221_v5 = vpop.xlane.xlu0 %220 }
  0xb0   : > { %v222_v6 = vsub.f32 %v217_v0, %v221_v5 }
  0xb2   : > { %v223_v7 = vmul.f32 1.442695, %v222_v6 }
  0xb4   : > { %407 = vpow2.f32 %v223_v7 }
  0xbe   : > { %v408_v8 = vpop.eup %407 }
  0xbf   : > { %v225_v9 = vpack.c.bf16 %v408_v8, %v408_v8 }
  0xc1   : > { %392 = vmatmul.mubr.msk.bf16.vlgmr.msra.gmra.mrb[0].mxu0 %vm218_vm0, %v225_v9 }
 0x194   : > { %v268_v10 = vpop.f32.mrb[0].mxu0 }
 0x195   : > { %277 = vrot.lane.b32.xlu0 %v268_v10, %s438_s5  ;;  %v393_v11 = vpop.f32.mrb[1].mxu0  ;;  %vm274_vm3 = vcmp.ne.f32.partialorder %v268_v10, 0.0 }
 0x196   : > { %v271_v12 = vpop.f32.mrb[2].mxu0  ;;  %v275_v14 = vsel %vm274_vm3, %v268_v10, 1.0 }
 0x197   : > { %v394_v13 = vpop.f32.mrb[3].mxu0  ;;  %409 = vrcp.f32 %v275_v14 }
 0x1a1   : > { %v410_v16 = vpop.eup %409 }
 0x207   : > { %v278_v15 = vpop.permute.xlu0 %277 }
 0x208   : > { %v280_v17 = vsel %vm274_vm3, %v278_v15, 1.0 }
 0x209   : > { %v282_v18 = vmul.f32 %v410_v16, %v280_v17 }
 0x20b   : > { %411 = vlog2.f32 %v282_v18 }
 0x215   : > { %v412_v19 = vpop.eup %411 }
 0x216   : > { %v284_v20 = vmul.f32 0.6931472, %v412_v19 }
 0x218   : > { %v285_v22 = vsel %vm274_vm3, %v284_v20, 0.0 }
 0x219   : > { %v293_v23 = vmul.f32 %v384_v21, %v285_v22 }
 0x21b   : > { %v295_v24 = vsel %vm294_vm4, %v293_v23, 0.0 }
 0x21c   : > { %296 = vadd.xlane.f32.xlu1 %v295_v24 }
 0x2a9   : > { %v297_v29 = vpop.xlane.xlu1 %296 }
 0x2aa   : > { %v304_v30 = vrot.slane %v297_v29, %v303_v28 }
 0x2ac   : > { %307 = vst.msk [vmem:[%s215_s12] sm:$0x1] %vm306_vm5, %v304_v30 }
 0x2ad PF: > { %s20_s20 = sadd.s32 1, %s433_s20  }
 0x2ae   : > { %p17_p11 = scmp.ge.s32.totalorder %s20_s20, 14  }
 0x2b0   :  { %19 = sbr.rel (!%p17_p11) target bundleno = 16 (0x10), region = 68 }

</bundles_post_ra>
